<compile_context>
chip_gen: v7x
topology: tpu7x:2x2x1
jax: 0.10.0
libtpu: 0.0.40
codegen_flags: <defaults>
</compile_context>

<pallas_src>
import functools

import numpy as np
import jax
import jax.numpy as jnp
from jax import lax
from jax.experimental import pallas as pl
from jax.experimental.pallas import tpu as pltpu

EPS = float(np.finfo(float).eps)   # matches np.finfo(float).eps in the torch code
WIN = 81.0                         # win_size = 9 * 9 (as written in the torch module)


def _cc_kernel(img_ref, tgt_ref, w_ref, b_ref, out_ref, *, k, img_w, n_images):
    """One grid step: `nb` lane-packed groups of `k` images each, (nb, H, k*W)."""
    nb, H, Wp = img_ref.shape
    Ho, Wop = H - 2, Wp - 2
    inv_win = 1.0 / WIN

    # Conv weights / bias live in SMEM; read the 10 scalars exactly once.
    w = [w_ref[i] for i in range(9)]
    bias = b_ref[0]

    def conv3x3(x):
        # Valid 3x3 cross-correlation (what nn.Conv2d computes) + bias.
        # Lane-direction (dx) shifts hoisted: 3 lane slices per conv input,
        # remaining taps are cheap sublane slices of those.
        xs = [x[:, :, dx:dx + Wop] for dx in range(3)]
        acc = w[0] * xs[0][:, 0:Ho, :]            # init with first tap (no zeros+add)
        for dy in range(3):
            for dx in range(3):
                if dy == 0 and dx == 0:
                    continue
                acc = acc + w[dy * 3 + dx] * xs[dx][:, dy:dy + Ho, :]
        return acc + bias

    I = img_ref[...]
    J = tgt_ref[...]

    # Interleave the NCC algebra with the convs so each conv sum / product is
    # folded into cross / var immediately and can die right away (~6 live
    # full-size arrays at peak instead of ~9).  Algebraically identical to the
    # torch formulation: cross = IJ_sum - I_sum*J_sum/81, var = X2_sum - X_sum^2/81.
    I_sum = conv3x3(I)
    J_sum = conv3x3(J)
    cross = conv3x3(I * J) - I_sum * J_sum * inv_win
    I_var = conv3x3(I * I) - I_sum * I_sum * inv_win   # I, I_sum dead after this
    J_var = conv3x3(J * J) - J_sum * J_sum * inv_win   # J, J_sum dead after this

    # Reciprocal on the (otherwise idle) EUP + one Newton step (~f32-exact)
    # instead of a multi-op VALU divide sequence.
    den = I_var * J_var + EPS
    r = pl.reciprocal(den, approx=True)
    r = r * (2.0 - den * r)
    cc = cross * cross * r

    # Validity mask for the lane-packed layout:
    #  * output columns whose 3-wide window crosses a packed-image boundary
    #  * columns belonging to zero-padded (non-existent) batch entries
    col = lax.broadcasted_iota(jnp.int32, (nb, Ho, Wop), 2)
    grp = lax.broadcasted_iota(jnp.int32, (nb, Ho, Wop), 0)
    img_in_grp = jnp.zeros((nb, Ho, Wop), jnp.int32)
    for j in range(1, k):                         # static unroll, k <= 128 // W
        img_in_grp = img_in_grp + (col >= j * img_w).astype(jnp.int32)
    local_col = col - img_w * img_in_grp
    global_img = pl.program_id(0) * (nb * k) + grp * k + img_in_grp
    valid = (local_col < img_w - 2) & (global_img < n_images)

    # Per-chunk partial sum; mean / negation happen once in the wrapper.
    out_ref[...] = jnp.sum(jnp.where(valid, cc, 0.0), keepdims=True)


def cc_loss_pallas(image, target, weight, bias):
    """image, target: (N, 1, H, W) float32; weight: (1, 1, 3, 3); bias: (1,)."""
    N, C, H, W = image.shape
    assert C == 1, "CCLoss conv has in_channels == out_channels == 1"
    Ho, Wo = H - 2, W - 2

    img = image[:, 0, :, :].astype(jnp.float32)
    tgt = target[:, 0, :, :].astype(jnp.float32)
    w_flat = weight.reshape(9).astype(jnp.float32)
    b = bias.reshape(1).astype(jnp.float32)

    # ---- lane repacking ------------------------------------------------------
    k = max(1, min(128 // W, N)) if W < 128 else 1
    Wp = k * W
    n_groups = -(-N // k)

    # ---- generation-aware per-step tile sizing -------------------------------
    try:
        info = pltpu.get_tpu_info()
        vmem_bytes = int(getattr(info, "vmem_capacity_bytes", 64 * 1024 * 1024))
    except Exception:
        vmem_bytes = 64 * 1024 * 1024
    if vmem_bytes >= 100 * 1024 * 1024:        # v5e / v6e: 128 MiB physical VMEM
        max_block_elems = 1024 * 1024          # ~4 MiB f32 per input per step
        vmem_limit = 96 * 1024 * 1024
    else:                                      # v7x: 64 MiB per TensorCore
        max_block_elems = 256 * 1024           # ~1 MiB f32 per input per step
        vmem_limit = 48 * 1024 * 1024

    nb = max(1, min(n_groups, max_block_elems // (H * Wp)))
    n_chunks = -(-n_groups // nb)
    if n_chunks == 1 and n_groups >= 2:
        # Guarantee >= 2 chunks so the "parallel" batch axis can shard across
        # both TensorCores on v7x.
        nb = (n_groups + 1) // 2
        n_chunks = -(-n_groups // nb)
    n_groups_pad = n_chunks * nb
    n_pad = n_groups_pad * k                   # padded batch (masked in-kernel)

    def pack(x):                               # (N, H, W) -> (n_groups_pad, H, k*W)
        if n_pad > N:
            x = jnp.concatenate(
                [x, jnp.zeros((n_pad - N, H, W), jnp.float32)], axis=0)
        x = x.reshape(n_groups_pad, k, H, W)
        return jnp.transpose(x, (0, 2, 1, 3)).reshape(n_groups_pad, H, Wp)

    img_p = pack(img)
    tgt_p = pack(tgt)

    kernel = functools.partial(_cc_kernel, k=k, img_w=W, n_images=N)
    partials = pl.pallas_call(
        kernel,
        out_shape=jax.ShapeDtypeStruct((n_chunks, 1, 1), jnp.float32),
        grid_spec=pltpu.PrefetchScalarGridSpec(
            num_scalar_prefetch=0,
            grid=(n_chunks,),
            in_specs=[
                pl.BlockSpec((nb, H, Wp), lambda n: (n, 0, 0)),
                pl.BlockSpec((nb, H, Wp), lambda n: (n, 0, 0)),
                pl.BlockSpec(memory_space=pltpu.MemorySpace.SMEM),   # 9 conv weights
                pl.BlockSpec(memory_space=pltpu.MemorySpace.SMEM),   # bias
            ],
            out_specs=pl.BlockSpec((1, 1, 1), lambda n: (n, 0, 0)),
        ),
        compiler_params=pltpu.CompilerParams(
            dimension_semantics=("parallel",),   # per-chunk partials, no cross-step dep
            vmem_limit_bytes=vmem_limit,
        ),
    )(img_p, tgt_p, w_flat, b)

    # Final reduction + normalization (done once in the wrapper).
    return -1.0 * jnp.sum(partials) / float(N * Ho * Wo)


def cc_loss_ref(image, target, weight, bias):
    """Pure-JAX reference mirroring the original PyTorch math (exact divides)."""
    N, C, H, W = image.shape
    Ho, Wo = H - 2, W - 2
    w = weight.reshape(3, 3)
    b = bias.reshape(())

    def conv3x3(x):  # x: (N, H, W), valid 3x3 conv with bias
        acc = jnp.zeros((N, Ho, Wo), jnp.float32)
        for dy in range(3):
            for dx in range(3):
                acc = acc + w[dy, dx] * x[:, dy:dy + Ho, dx:dx + Wo]
        return acc + b

    I = image[:, 0]
    J = target[:, 0]
    I_sum = conv3x3(I)
    J_sum = conv3x3(J)
    I2_sum = conv3x3(I * I)
    J2_sum = conv3x3(J * J)
    IJ_sum = conv3x3(I * J)
    u_I = I_sum / WIN
    u_J = J_sum / WIN
    cross = IJ_sum - u_J * I_sum - u_I * J_sum + u_I * u_J * WIN
    I_var = I2_sum - 2.0 * u_I * I_sum + u_I * u_I * WIN
    J_var = J2_sum - 2.0 * u_J * J_sum + u_J * u_J * WIN
    cc = cross * cross / (I_var * J_var + EPS)
    return -1.0 * jnp.mean(cc)


if __name__ == "__main__":
    key = jax.random.PRNGKey(0)
    k1, k2, k3, k4 = jax.random.split(key, 4)

    N, C, H, W = 2, 1, 16, 16
    image = jax.random.normal(k1, (N, C, H, W), jnp.float32)
    target = jax.random.normal(k2, (N, C, H, W), jnp.float32)

    # Box-filter-like positive conv init (deterministic).  Positive weights keep
    # the local variances well conditioned so the numerical check is tight; the
    # kernel itself handles arbitrary Conv2d weights (same math as the module,
    # which inherits the near-zero-denominator sensitivity from the torch code).
    weight = jax.random.uniform(k3, (1, 1, 3, 3), jnp.float32, 0.05, 1.0 / 3.0)
    bias = jax.random.uniform(k4, (1,), jnp.float32, -0.05, 0.05)

    loss = cc_loss_pallas(image, target, weight, bias)
    jax.block_until_ready(loss)

    ref = cc_loss_ref(image, target, weight, bias)
    assert jnp.allclose(loss, ref, rtol=1e-3, atol=1e-5), (loss, ref)
    print("KERNEL_OK")
</pallas_src>

<mosaic_0001>
module attributes {stable_mosaic.version = 11 : i64} {
  func.func @_cc_kernel(%arg0: i32, %arg1: memref<1x16x32xf32, #tpu.memory_space<vmem>>, %arg2: memref<1x16x32xf32, #tpu.memory_space<vmem>>, %arg3: memref<9xf32, #tpu.memory_space<smem>>, %arg4: memref<1xf32, #tpu.memory_space<smem>>, %arg5: memref<1x1x1xf32, #tpu.memory_space<vmem>>) attributes {dimension_semantics = [#tpu.dimension_semantics<parallel>], iteration_bounds = array<i64: 1>, scalar_prefetch = 0 : i64, scratch_operands = 0 : i64, tpu.core_type = #tpu.core_type<tc>, window_params = [{transform_indices = @transform_0, window_bounds = array<i64: 1, 16, 32>}, {transform_indices = @transform_1, window_bounds = array<i64: 1, 16, 32>}, {transform_indices = @transform_2, window_bounds = array<i64: 9>}, {transform_indices = @transform_3, window_bounds = array<i64: 1>}, {transform_indices = @transform_4, window_bounds = array<i64: 1, 1, 1>}]} {
    %c0 = arith.constant 0 : index
    %0 = memref.load %arg3[%c0] : memref<9xf32, #tpu.memory_space<smem>>
    %c1 = arith.constant 1 : index
    %1 = memref.load %arg3[%c1] : memref<9xf32, #tpu.memory_space<smem>>
    %c2 = arith.constant 2 : index
    %2 = memref.load %arg3[%c2] : memref<9xf32, #tpu.memory_space<smem>>
    %c3 = arith.constant 3 : index
    %3 = memref.load %arg3[%c3] : memref<9xf32, #tpu.memory_space<smem>>
    %c4 = arith.constant 4 : index
    %4 = memref.load %arg3[%c4] : memref<9xf32, #tpu.memory_space<smem>>
    %c5 = arith.constant 5 : index
    %5 = memref.load %arg3[%c5] : memref<9xf32, #tpu.memory_space<smem>>
    %c6 = arith.constant 6 : index
    %6 = memref.load %arg3[%c6] : memref<9xf32, #tpu.memory_space<smem>>
    %c7 = arith.constant 7 : index
    %7 = memref.load %arg3[%c7] : memref<9xf32, #tpu.memory_space<smem>>
    %c8 = arith.constant 8 : index
    %8 = memref.load %arg3[%c8] : memref<9xf32, #tpu.memory_space<smem>>
    %c0_0 = arith.constant 0 : index
    %9 = memref.load %arg4[%c0_0] : memref<1xf32, #tpu.memory_space<smem>>
    %c0_1 = arith.constant 0 : index
    %c0_2 = arith.constant 0 : index
    %c0_3 = arith.constant 0 : index
    %10 = vector.load %arg1[%c0_1, %c0_2, %c0_3] : memref<1x16x32xf32, #tpu.memory_space<vmem>>, vector<1x16x32xf32>
    %c0_4 = arith.constant 0 : index
    %c0_5 = arith.constant 0 : index
    %c0_6 = arith.constant 0 : index
    %11 = vector.load %arg2[%c0_4, %c0_5, %c0_6] : memref<1x16x32xf32, #tpu.memory_space<vmem>>, vector<1x16x32xf32>
    %12 = vector.extract_strided_slice %10 {offsets = [0, 0, 0], sizes = [1, 16, 30], strides = [1, 1, 1]} : vector<1x16x32xf32> to vector<1x16x30xf32>
    %13 = vector.extract_strided_slice %10 {offsets = [0, 0, 1], sizes = [1, 16, 30], strides = [1, 1, 1]} : vector<1x16x32xf32> to vector<1x16x30xf32>
    %14 = vector.extract_strided_slice %10 {offsets = [0, 0, 2], sizes = [1, 16, 30], strides = [1, 1, 1]} : vector<1x16x32xf32> to vector<1x16x30xf32>
    %15 = vector.extract_strided_slice %12 {offsets = [0, 0, 0], sizes = [1, 14, 30], strides = [1, 1, 1]} : vector<1x16x30xf32> to vector<1x14x30xf32>
    %16 = vector.broadcast %0 : f32 to vector<1x14x30xf32>
    %17 = arith.mulf %16, %15 : vector<1x14x30xf32>
    %18 = vector.extract_strided_slice %13 {offsets = [0, 0, 0], sizes = [1, 14, 30], strides = [1, 1, 1]} : vector<1x16x30xf32> to vector<1x14x30xf32>
    %19 = vector.broadcast %1 : f32 to vector<1x14x30xf32>
    %20 = arith.mulf %19, %18 : vector<1x14x30xf32>
    %21 = arith.addf %17, %20 : vector<1x14x30xf32>
    %22 = vector.extract_strided_slice %14 {offsets = [0, 0, 0], sizes = [1, 14, 30], strides = [1, 1, 1]} : vector<1x16x30xf32> to vector<1x14x30xf32>
    %23 = vector.broadcast %2 : f32 to vector<1x14x30xf32>
    %24 = arith.mulf %23, %22 : vector<1x14x30xf32>
    %25 = arith.addf %21, %24 : vector<1x14x30xf32>
    %26 = vector.extract_strided_slice %12 {offsets = [0, 1, 0], sizes = [1, 14, 30], strides = [1, 1, 1]} : vector<1x16x30xf32> to vector<1x14x30xf32>
    %27 = vector.broadcast %3 : f32 to vector<1x14x30xf32>
    %28 = arith.mulf %27, %26 : vector<1x14x30xf32>
    %29 = arith.addf %25, %28 : vector<1x14x30xf32>
    %30 = vector.extract_strided_slice %13 {offsets = [0, 1, 0], sizes = [1, 14, 30], strides = [1, 1, 1]} : vector<1x16x30xf32> to vector<1x14x30xf32>
    %31 = vector.broadcast %4 : f32 to vector<1x14x30xf32>
    %32 = arith.mulf %31, %30 : vector<1x14x30xf32>
    %33 = arith.addf %29, %32 : vector<1x14x30xf32>
    %34 = vector.extract_strided_slice %14 {offsets = [0, 1, 0], sizes = [1, 14, 30], strides = [1, 1, 1]} : vector<1x16x30xf32> to vector<1x14x30xf32>
    %35 = vector.broadcast %5 : f32 to vector<1x14x30xf32>
    %36 = arith.mulf %35, %34 : vector<1x14x30xf32>
    %37 = arith.addf %33, %36 : vector<1x14x30xf32>
    %38 = vector.extract_strided_slice %12 {offsets = [0, 2, 0], sizes = [1, 14, 30], strides = [1, 1, 1]} : vector<1x16x30xf32> to vector<1x14x30xf32>
    %39 = vector.broadcast %6 : f32 to vector<1x14x30xf32>
    %40 = arith.mulf %39, %38 : vector<1x14x30xf32>
    %41 = arith.addf %37, %40 : vector<1x14x30xf32>
    %42 = vector.extract_strided_slice %13 {offsets = [0, 2, 0], sizes = [1, 14, 30], strides = [1, 1, 1]} : vector<1x16x30xf32> to vector<1x14x30xf32>
    %43 = vector.broadcast %7 : f32 to vector<1x14x30xf32>
    %44 = arith.mulf %43, %42 : vector<1x14x30xf32>
    %45 = arith.addf %41, %44 : vector<1x14x30xf32>
    %46 = vector.extract_strided_slice %14 {offsets = [0, 2, 0], sizes = [1, 14, 30], strides = [1, 1, 1]} : vector<1x16x30xf32> to vector<1x14x30xf32>
    %47 = vector.broadcast %8 : f32 to vector<1x14x30xf32>
    %48 = arith.mulf %47, %46 : vector<1x14x30xf32>
    %49 = arith.addf %45, %48 : vector<1x14x30xf32>
    %50 = vector.broadcast %9 : f32 to vector<1x14x30xf32>
    %51 = arith.addf %49, %50 : vector<1x14x30xf32>
    %52 = vector.extract_strided_slice %11 {offsets = [0, 0, 0], sizes = [1, 16, 30], strides = [1, 1, 1]} : vector<1x16x32xf32> to vector<1x16x30xf32>
    %53 = vector.extract_strided_slice %11 {offsets = [0, 0, 1], sizes = [1, 16, 30], strides = [1, 1, 1]} : vector<1x16x32xf32> to vector<1x16x30xf32>
    %54 = vector.extract_strided_slice %11 {offsets = [0, 0, 2], sizes = [1, 16, 30], strides = [1, 1, 1]} : vector<1x16x32xf32> to vector<1x16x30xf32>
    %55 = vector.extract_strided_slice %52 {offsets = [0, 0, 0], sizes = [1, 14, 30], strides = [1, 1, 1]} : vector<1x16x30xf32> to vector<1x14x30xf32>
    %56 = vector.broadcast %0 : f32 to vector<1x14x30xf32>
    %57 = arith.mulf %56, %55 : vector<1x14x30xf32>
    %58 = vector.extract_strided_slice %53 {offsets = [0, 0, 0], sizes = [1, 14, 30], strides = [1, 1, 1]} : vector<1x16x30xf32> to vector<1x14x30xf32>
    %59 = vector.broadcast %1 : f32 to vector<1x14x30xf32>
    %60 = arith.mulf %59, %58 : vector<1x14x30xf32>
    %61 = arith.addf %57, %60 : vector<1x14x30xf32>
    %62 = vector.extract_strided_slice %54 {offsets = [0, 0, 0], sizes = [1, 14, 30], strides = [1, 1, 1]} : vector<1x16x30xf32> to vector<1x14x30xf32>
    %63 = vector.broadcast %2 : f32 to vector<1x14x30xf32>
    %64 = arith.mulf %63, %62 : vector<1x14x30xf32>
    %65 = arith.addf %61, %64 : vector<1x14x30xf32>
    %66 = vector.extract_strided_slice %52 {offsets = [0, 1, 0], sizes = [1, 14, 30], strides = [1, 1, 1]} : vector<1x16x30xf32> to vector<1x14x30xf32>
    %67 = vector.broadcast %3 : f32 to vector<1x14x30xf32>
    %68 = arith.mulf %67, %66 : vector<1x14x30xf32>
    %69 = arith.addf %65, %68 : vector<1x14x30xf32>
    %70 = vector.extract_strided_slice %53 {offsets = [0, 1, 0], sizes = [1, 14, 30], strides = [1, 1, 1]} : vector<1x16x30xf32> to vector<1x14x30xf32>
    %71 = vector.broadcast %4 : f32 to vector<1x14x30xf32>
    %72 = arith.mulf %71, %70 : vector<1x14x30xf32>
    %73 = arith.addf %69, %72 : vector<1x14x30xf32>
    %74 = vector.extract_strided_slice %54 {offsets = [0, 1, 0], sizes = [1, 14, 30], strides = [1, 1, 1]} : vector<1x16x30xf32> to vector<1x14x30xf32>
    %75 = vector.broadcast %5 : f32 to vector<1x14x30xf32>
    %76 = arith.mulf %75, %74 : vector<1x14x30xf32>
    %77 = arith.addf %73, %76 : vector<1x14x30xf32>
    %78 = vector.extract_strided_slice %52 {offsets = [0, 2, 0], sizes = [1, 14, 30], strides = [1, 1, 1]} : vector<1x16x30xf32> to vector<1x14x30xf32>
    %79 = vector.broadcast %6 : f32 to vector<1x14x30xf32>
    %80 = arith.mulf %79, %78 : vector<1x14x30xf32>
    %81 = arith.addf %77, %80 : vector<1x14x30xf32>
    %82 = vector.extract_strided_slice %53 {offsets = [0, 2, 0], sizes = [1, 14, 30], strides = [1, 1, 1]} : vector<1x16x30xf32> to vector<1x14x30xf32>
    %83 = vector.broadcast %7 : f32 to vector<1x14x30xf32>
    %84 = arith.mulf %83, %82 : vector<1x14x30xf32>
    %85 = arith.addf %81, %84 : vector<1x14x30xf32>
    %86 = vector.extract_strided_slice %54 {offsets = [0, 2, 0], sizes = [1, 14, 30], strides = [1, 1, 1]} : vector<1x16x30xf32> to vector<1x14x30xf32>
    %87 = vector.broadcast %8 : f32 to vector<1x14x30xf32>
    %88 = arith.mulf %87, %86 : vector<1x14x30xf32>
    %89 = arith.addf %85, %88 : vector<1x14x30xf32>
    %90 = vector.broadcast %9 : f32 to vector<1x14x30xf32>
    %91 = arith.addf %89, %90 : vector<1x14x30xf32>
    %92 = arith.mulf %10, %11 : vector<1x16x32xf32>
    %93 = vector.extract_strided_slice %92 {offsets = [0, 0, 0], sizes = [1, 16, 30], strides = [1, 1, 1]} : vector<1x16x32xf32> to vector<1x16x30xf32>
    %94 = vector.extract_strided_slice %92 {offsets = [0, 0, 1], sizes = [1, 16, 30], strides = [1, 1, 1]} : vector<1x16x32xf32> to vector<1x16x30xf32>
    %95 = vector.extract_strided_slice %92 {offsets = [0, 0, 2], sizes = [1, 16, 30], strides = [1, 1, 1]} : vector<1x16x32xf32> to vector<1x16x30xf32>
    %96 = vector.extract_strided_slice %93 {offsets = [0, 0, 0], sizes = [1, 14, 30], strides = [1, 1, 1]} : vector<1x16x30xf32> to vector<1x14x30xf32>
    %97 = vector.broadcast %0 : f32 to vector<1x14x30xf32>
    %98 = arith.mulf %97, %96 : vector<1x14x30xf32>
    %99 = vector.extract_strided_slice %94 {offsets = [0, 0, 0], sizes = [1, 14, 30], strides = [1, 1, 1]} : vector<1x16x30xf32> to vector<1x14x30xf32>
    %100 = vector.broadcast %1 : f32 to vector<1x14x30xf32>
    %101 = arith.mulf %100, %99 : vector<1x14x30xf32>
    %102 = arith.addf %98, %101 : vector<1x14x30xf32>
    %103 = vector.extract_strided_slice %95 {offsets = [0, 0, 0], sizes = [1, 14, 30], strides = [1, 1, 1]} : vector<1x16x30xf32> to vector<1x14x30xf32>
    %104 = vector.broadcast %2 : f32 to vector<1x14x30xf32>
    %105 = arith.mulf %104, %103 : vector<1x14x30xf32>
    %106 = arith.addf %102, %105 : vector<1x14x30xf32>
    %107 = vector.extract_strided_slice %93 {offsets = [0, 1, 0], sizes = [1, 14, 30], strides = [1, 1, 1]} : vector<1x16x30xf32> to vector<1x14x30xf32>
    %108 = vector.broadcast %3 : f32 to vector<1x14x30xf32>
    %109 = arith.mulf %108, %107 : vector<1x14x30xf32>
    %110 = arith.addf %106, %109 : vector<1x14x30xf32>
    %111 = vector.extract_strided_slice %94 {offsets = [0, 1, 0], sizes = [1, 14, 30], strides = [1, 1, 1]} : vector<1x16x30xf32> to vector<1x14x30xf32>
    %112 = vector.broadcast %4 : f32 to vector<1x14x30xf32>
    %113 = arith.mulf %112, %111 : vector<1x14x30xf32>
    %114 = arith.addf %110, %113 : vector<1x14x30xf32>
    %115 = vector.extract_strided_slice %95 {offsets = [0, 1, 0], sizes = [1, 14, 30], strides = [1, 1, 1]} : vector<1x16x30xf32> to vector<1x14x30xf32>
    %116 = vector.broadcast %5 : f32 to vector<1x14x30xf32>
    %117 = arith.mulf %116, %115 : vector<1x14x30xf32>
    %118 = arith.addf %114, %117 : vector<1x14x30xf32>
    %119 = vector.extract_strided_slice %93 {offsets = [0, 2, 0], sizes = [1, 14, 30], strides = [1, 1, 1]} : vector<1x16x30xf32> to vector<1x14x30xf32>
    %120 = vector.broadcast %6 : f32 to vector<1x14x30xf32>
    %121 = arith.mulf %120, %119 : vector<1x14x30xf32>
    %122 = arith.addf %118, %121 : vector<1x14x30xf32>
    %123 = vector.extract_strided_slice %94 {offsets = [0, 2, 0], sizes = [1, 14, 30], strides = [1, 1, 1]} : vector<1x16x30xf32> to vector<1x14x30xf32>
    %124 = vector.broadcast %7 : f32 to vector<1x14x30xf32>
    %125 = arith.mulf %124, %123 : vector<1x14x30xf32>
    %126 = arith.addf %122, %125 : vector<1x14x30xf32>
    %127 = vector.extract_strided_slice %95 {offsets = [0, 2, 0], sizes = [1, 14, 30], strides = [1, 1, 1]} : vector<1x16x30xf32> to vector<1x14x30xf32>
    %128 = vector.broadcast %8 : f32 to vector<1x14x30xf32>
    %129 = arith.mulf %128, %127 : vector<1x14x30xf32>
    %130 = arith.addf %126, %129 : vector<1x14x30xf32>
    %131 = vector.broadcast %9 : f32 to vector<1x14x30xf32>
    %132 = arith.addf %130, %131 : vector<1x14x30xf32>
    %133 = arith.mulf %51, %91 : vector<1x14x30xf32>
    %cst = arith.constant 0.0123456791 : f32
    %134 = vector.broadcast %cst : f32 to vector<1x14x30xf32>
    %135 = arith.mulf %133, %134 : vector<1x14x30xf32>
    %136 = arith.subf %132, %135 : vector<1x14x30xf32>
    %137 = arith.mulf %10, %10 : vector<1x16x32xf32>
    %138 = vector.extract_strided_slice %137 {offsets = [0, 0, 0], sizes = [1, 16, 30], strides = [1, 1, 1]} : vector<1x16x32xf32> to vector<1x16x30xf32>
    %139 = vector.extract_strided_slice %137 {offsets = [0, 0, 1], sizes = [1, 16, 30], strides = [1, 1, 1]} : vector<1x16x32xf32> to vector<1x16x30xf32>
    %140 = vector.extract_strided_slice %137 {offsets = [0, 0, 2], sizes = [1, 16, 30], strides = [1, 1, 1]} : vector<1x16x32xf32> to vector<1x16x30xf32>
    %141 = vector.extract_strided_slice %138 {offsets = [0, 0, 0], sizes = [1, 14, 30], strides = [1, 1, 1]} : vector<1x16x30xf32> to vector<1x14x30xf32>
    %142 = vector.broadcast %0 : f32 to vector<1x14x30xf32>
    %143 = arith.mulf %142, %141 : vector<1x14x30xf32>
    %144 = vector.extract_strided_slice %139 {offsets = [0, 0, 0], sizes = [1, 14, 30], strides = [1, 1, 1]} : vector<1x16x30xf32> to vector<1x14x30xf32>
    %145 = vector.broadcast %1 : f32 to vector<1x14x30xf32>
    %146 = arith.mulf %145, %144 : vector<1x14x30xf32>
    %147 = arith.addf %143, %146 : vector<1x14x30xf32>
    %148 = vector.extract_strided_slice %140 {offsets = [0, 0, 0], sizes = [1, 14, 30], strides = [1, 1, 1]} : vector<1x16x30xf32> to vector<1x14x30xf32>
    %149 = vector.broadcast %2 : f32 to vector<1x14x30xf32>
    %150 = arith.mulf %149, %148 : vector<1x14x30xf32>
    %151 = arith.addf %147, %150 : vector<1x14x30xf32>
    %152 = vector.extract_strided_slice %138 {offsets = [0, 1, 0], sizes = [1, 14, 30], strides = [1, 1, 1]} : vector<1x16x30xf32> to vector<1x14x30xf32>
    %153 = vector.broadcast %3 : f32 to vector<1x14x30xf32>
    %154 = arith.mulf %153, %152 : vector<1x14x30xf32>
    %155 = arith.addf %151, %154 : vector<1x14x30xf32>
    %156 = vector.extract_strided_slice %139 {offsets = [0, 1, 0], sizes = [1, 14, 30], strides = [1, 1, 1]} : vector<1x16x30xf32> to vector<1x14x30xf32>
    %157 = vector.broadcast %4 : f32 to vector<1x14x30xf32>
    %158 = arith.mulf %157, %156 : vector<1x14x30xf32>
    %159 = arith.addf %155, %158 : vector<1x14x30xf32>
    %160 = vector.extract_strided_slice %140 {offsets = [0, 1, 0], sizes = [1, 14, 30], strides = [1, 1, 1]} : vector<1x16x30xf32> to vector<1x14x30xf32>
    %161 = vector.broadcast %5 : f32 to vector<1x14x30xf32>
    %162 = arith.mulf %161, %160 : vector<1x14x30xf32>
    %163 = arith.addf %159, %162 : vector<1x14x30xf32>
    %164 = vector.extract_strided_slice %138 {offsets = [0, 2, 0], sizes = [1, 14, 30], strides = [1, 1, 1]} : vector<1x16x30xf32> to vector<1x14x30xf32>
    %165 = vector.broadcast %6 : f32 to vector<1x14x30xf32>
    %166 = arith.mulf %165, %164 : vector<1x14x30xf32>
    %167 = arith.addf %163, %166 : vector<1x14x30xf32>
    %168 = vector.extract_strided_slice %139 {offsets = [0, 2, 0], sizes = [1, 14, 30], strides = [1, 1, 1]} : vector<1x16x30xf32> to vector<1x14x30xf32>
    %169 = vector.broadcast %7 : f32 to vector<1x14x30xf32>
    %170 = arith.mulf %169, %168 : vector<1x14x30xf32>
    %171 = arith.addf %167, %170 : vector<1x14x30xf32>
    %172 = vector.extract_strided_slice %140 {offsets = [0, 2, 0], sizes = [1, 14, 30], strides = [1, 1, 1]} : vector<1x16x30xf32> to vector<1x14x30xf32>
    %173 = vector.broadcast %8 : f32 to vector<1x14x30xf32>
    %174 = arith.mulf %173, %172 : vector<1x14x30xf32>
    %175 = arith.addf %171, %174 : vector<1x14x30xf32>
    %176 = vector.broadcast %9 : f32 to vector<1x14x30xf32>
    %177 = arith.addf %175, %176 : vector<1x14x30xf32>
    %178 = arith.mulf %51, %51 : vector<1x14x30xf32>
    %cst_7 = arith.constant 0.0123456791 : f32
    %179 = vector.broadcast %cst_7 : f32 to vector<1x14x30xf32>
    %180 = arith.mulf %178, %179 : vector<1x14x30xf32>
    %181 = arith.subf %177, %180 : vector<1x14x30xf32>
    %182 = arith.mulf %11, %11 : vector<1x16x32xf32>
    %183 = vector.extract_strided_slice %182 {offsets = [0, 0, 0], sizes = [1, 16, 30], strides = [1, 1, 1]} : vector<1x16x32xf32> to vector<1x16x30xf32>
    %184 = vector.extract_strided_slice %182 {offsets = [0, 0, 1], sizes = [1, 16, 30], strides = [1, 1, 1]} : vector<1x16x32xf32> to vector<1x16x30xf32>
    %185 = vector.extract_strided_slice %182 {offsets = [0, 0, 2], sizes = [1, 16, 30], strides = [1, 1, 1]} : vector<1x16x32xf32> to vector<1x16x30xf32>
    %186 = vector.extract_strided_slice %183 {offsets = [0, 0, 0], sizes = [1, 14, 30], strides = [1, 1, 1]} : vector<1x16x30xf32> to vector<1x14x30xf32>
    %187 = vector.broadcast %0 : f32 to vector<1x14x30xf32>
    %188 = arith.mulf %187, %186 : vector<1x14x30xf32>
    %189 = vector.extract_strided_slice %184 {offsets = [0, 0, 0], sizes = [1, 14, 30], strides = [1, 1, 1]} : vector<1x16x30xf32> to vector<1x14x30xf32>
    %190 = vector.broadcast %1 : f32 to vector<1x14x30xf32>
    %191 = arith.mulf %190, %189 : vector<1x14x30xf32>
    %192 = arith.addf %188, %191 : vector<1x14x30xf32>
    %193 = vector.extract_strided_slice %185 {offsets = [0, 0, 0], sizes = [1, 14, 30], strides = [1, 1, 1]} : vector<1x16x30xf32> to vector<1x14x30xf32>
    %194 = vector.broadcast %2 : f32 to vector<1x14x30xf32>
    %195 = arith.mulf %194, %193 : vector<1x14x30xf32>
    %196 = arith.addf %192, %195 : vector<1x14x30xf32>
    %197 = vector.extract_strided_slice %183 {offsets = [0, 1, 0], sizes = [1, 14, 30], strides = [1, 1, 1]} : vector<1x16x30xf32> to vector<1x14x30xf32>
    %198 = vector.broadcast %3 : f32 to vector<1x14x30xf32>
    %199 = arith.mulf %198, %197 : vector<1x14x30xf32>
    %200 = arith.addf %196, %199 : vector<1x14x30xf32>
    %201 = vector.extract_strided_slice %184 {offsets = [0, 1, 0], sizes = [1, 14, 30], strides = [1, 1, 1]} : vector<1x16x30xf32> to vector<1x14x30xf32>
    %202 = vector.broadcast %4 : f32 to vector<1x14x30xf32>
    %203 = arith.mulf %202, %201 : vector<1x14x30xf32>
    %204 = arith.addf %200, %203 : vector<1x14x30xf32>
    %205 = vector.extract_strided_slice %185 {offsets = [0, 1, 0], sizes = [1, 14, 30], strides = [1, 1, 1]} : vector<1x16x30xf32> to vector<1x14x30xf32>
    %206 = vector.broadcast %5 : f32 to vector<1x14x30xf32>
    %207 = arith.mulf %206, %205 : vector<1x14x30xf32>
    %208 = arith.addf %204, %207 : vector<1x14x30xf32>
    %209 = vector.extract_strided_slice %183 {offsets = [0, 2, 0], sizes = [1, 14, 30], strides = [1, 1, 1]} : vector<1x16x30xf32> to vector<1x14x30xf32>
    %210 = vector.broadcast %6 : f32 to vector<1x14x30xf32>
    %211 = arith.mulf %210, %209 : vector<1x14x30xf32>
    %212 = arith.addf %208, %211 : vector<1x14x30xf32>
    %213 = vector.extract_strided_slice %184 {offsets = [0, 2, 0], sizes = [1, 14, 30], strides = [1, 1, 1]} : vector<1x16x30xf32> to vector<1x14x30xf32>
    %214 = vector.broadcast %7 : f32 to vector<1x14x30xf32>
    %215 = arith.mulf %214, %213 : vector<1x14x30xf32>
    %216 = arith.addf %212, %215 : vector<1x14x30xf32>
    %217 = vector.extract_strided_slice %185 {offsets = [0, 2, 0], sizes = [1, 14, 30], strides = [1, 1, 1]} : vector<1x16x30xf32> to vector<1x14x30xf32>
    %218 = vector.broadcast %8 : f32 to vector<1x14x30xf32>
    %219 = arith.mulf %218, %217 : vector<1x14x30xf32>
    %220 = arith.addf %216, %219 : vector<1x14x30xf32>
    %221 = vector.broadcast %9 : f32 to vector<1x14x30xf32>
    %222 = arith.addf %220, %221 : vector<1x14x30xf32>
    %223 = arith.mulf %91, %91 : vector<1x14x30xf32>
    %cst_8 = arith.constant 0.0123456791 : f32
    %224 = vector.broadcast %cst_8 : f32 to vector<1x14x30xf32>
    %225 = arith.mulf %223, %224 : vector<1x14x30xf32>
    %226 = arith.subf %222, %225 : vector<1x14x30xf32>
    %227 = arith.mulf %181, %226 : vector<1x14x30xf32>
    %cst_9 = arith.constant 2.22044605E-16 : f32
    %228 = vector.broadcast %cst_9 : f32 to vector<1x14x30xf32>
    %229 = arith.addf %227, %228 : vector<1x14x30xf32>
    %230 = tpu.reciprocal %229 {approx = true} : vector<1x14x30xf32> -> vector<1x14x30xf32>
    %231 = arith.mulf %229, %230 : vector<1x14x30xf32>
    %cst_10 = arith.constant 2.000000e+00 : f32
    %232 = vector.broadcast %cst_10 : f32 to vector<1x14x30xf32>
    %233 = arith.subf %232, %231 : vector<1x14x30xf32>
    %234 = arith.mulf %230, %233 : vector<1x14x30xf32>
    %235 = arith.mulf %136, %136 : vector<1x14x30xf32>
    %236 = arith.mulf %235, %234 : vector<1x14x30xf32>
    %237 = tpu.iota {dimensions = array<i32: 2>} : vector<1x14x30xi32>
    %238 = tpu.iota {dimensions = array<i32: 0>} : vector<1x14x30xi32>
    %c0_i32 = arith.constant 0 : i32
    %239 = vector.broadcast %c0_i32 : i32 to vector<1x14x30xi32>
    %c16_i32 = arith.constant 16 : i32
    %240 = vector.broadcast %c16_i32 : i32 to vector<1x14x30xi32>
    %241 = arith.cmpi sge, %237, %240 : vector<1x14x30xi32>
    %242 = arith.extui %241 : vector<1x14x30xi1> to vector<1x14x30xi32>
    %243 = arith.addi %239, %242 : vector<1x14x30xi32>
    %c16_i32_11 = arith.constant 16 : i32
    %244 = vector.broadcast %c16_i32_11 : i32 to vector<1x14x30xi32>
    %245 = arith.muli %244, %243 : vector<1x14x30xi32>
    %246 = arith.subi %237, %245 : vector<1x14x30xi32>
    %c2_i32 = arith.constant 2 : i32
    %247 = arith.muli %arg0, %c2_i32 : i32
    %c2_i32_12 = arith.constant 2 : i32
    %248 = vector.broadcast %c2_i32_12 : i32 to vector<1x14x30xi32>
    %249 = arith.muli %238, %248 : vector<1x14x30xi32>
    %250 = vector.broadcast %247 : i32 to vector<1x14x30xi32>
    %251 = arith.addi %250, %249 : vector<1x14x30xi32>
    %252 = arith.addi %251, %243 : vector<1x14x30xi32>
    %c14_i32 = arith.constant 14 : i32
    %253 = vector.broadcast %c14_i32 : i32 to vector<1x14x30xi32>
    %254 = arith.cmpi slt, %246, %253 : vector<1x14x30xi32>
    %c2_i32_13 = arith.constant 2 : i32
    %255 = vector.broadcast %c2_i32_13 : i32 to vector<1x14x30xi32>
    %256 = arith.cmpi slt, %252, %255 : vector<1x14x30xi32>
    %257 = arith.andi %254, %256 : vector<1x14x30xi1>
    %cst_14 = arith.constant 0.000000e+00 : f32
    %258 = vector.broadcast %cst_14 : f32 to vector<1x14x30xf32>
    %259 = arith.select %257, %236, %258 : vector<1x14x30xi1>, vector<1x14x30xf32>
    %260 = vector.shape_cast %259 : vector<1x14x30xf32> to vector<1x1x14x30xf32>
    %cst_15 = arith.constant dense<0.000000e+00> : vector<1xf32>
    %261 = vector.multi_reduction <add>, %260, %cst_15 [1, 2, 3] : vector<1x1x14x30xf32> to vector<1xf32>
    %262 = vector.shape_cast %261 : vector<1xf32> to vector<1x1x1x1xf32>
    %263 = vector.extract %262[0, 0, 0, 0] : f32 from vector<1x1x1x1xf32>
    %264 = vector.broadcast %263 : f32 to vector<1x1x1xf32>
    %c0_16 = arith.constant 0 : index
    %c0_17 = arith.constant 0 : index
    %c0_18 = arith.constant 0 : index
    %265 = vector.load %arg5[%c0_16, %c0_17, %c0_18] : memref<1x1x1xf32, #tpu.memory_space<vmem>>, vector<1x1x1xf32>
    tpu.vector_store %arg5[%c0_16, %c0_17, %c0_18], %264 {strides = array<i32>} : memref<1x1x1xf32, #tpu.memory_space<vmem>>, vector<1x1x1xf32>,
    return
  }
  func.func @transform_0(%arg0: i32) -> (i32, i32, i32) {
    %c0_i32 = arith.constant 0 : i32
    %c0_i32_0 = arith.constant 0 : i32
    %c0_i32_1 = arith.constant 0 : i32
    return %arg0, %c0_i32, %c0_i32_0 : i32, i32, i32
  }
  func.func @transform_1(%arg0: i32) -> (i32, i32, i32) {
    %c0_i32 = arith.constant 0 : i32
    %c0_i32_0 = arith.constant 0 : i32
    %c0_i32_1 = arith.constant 0 : i32
    return %arg0, %c0_i32, %c0_i32_0 : i32, i32, i32
  }
  func.func @transform_2(%arg0: i32) -> i32 {
    %c0_i32 = arith.constant 0 : i32
    %c0_i32_0 = arith.constant 0 : i32
    return %c0_i32 : i32
  }
  func.func @transform_3(%arg0: i32) -> i32 {
    %c0_i32 = arith.constant 0 : i32
    %c0_i32_0 = arith.constant 0 : i32
    return %c0_i32 : i32
  }
  func.func @transform_4(%arg0: i32) -> (i32, i32, i32) {
    %c0_i32 = arith.constant 0 : i32
    %c0_i32_0 = arith.constant 0 : i32
    %c0_i32_1 = arith.constant 0 : i32
    return %arg0, %c0_i32, %c0_i32_0 : i32, i32, i32
  }
}

</mosaic_0001>

<bundles_post_ra>
// kernel: tpu_custom_call.1
= control target key start
LH: loop header
LB: loop body
LE: loop exit
PB: predicated region body
PF: predicated region fallthrough
CT: control target
= control target key end

     0   :  { %10 = vsyncpa [#allocation4], 0  ;;  %s1370_s0 = inlined_call_operand.hbm [shape: f32[1,16,32], index: 0, kind: input, shape index: {}]   ;;  %s1371_s1 = inlined_call_operand.hbm [shape: f32[1,16,32], index: 1, kind: input, shape index: {}]   ;;  %s1372_s2 = inlined_call_operand.vmem [shape: f32[9], index: 2, kind: input, shape index: {}]   ;;  %s1373_s3 = inlined_call_operand.<no memory space> [shape: f32[1], index: 3, kind: input, shape index: {}]   ;;  %s1374_s4 = inlined_call_operand.hbm [shape: f32[1,1,1], index: 4, kind: output, shape index: {}]  }
   0x1   :  { %11 = vsyncpa [#allocation8], 0 }
   0x2   :  { %12 = vsyncpa [#allocation6], 0 }
   0x3   :  { %13 = vsyncpa [#allocation5], 0  ;;  %s833_s15 = smov [#allocation3]   ;;  %s747_s19 = scalar_lea.hbm %s1370_s0, 256 }
   0x4   :  { %s19_s16 = sshll.u32 %s833_s15, 4  ;;  %p748_p0 = scmp.ne.s32.totalorder %s1370_s0, %s747_s19  ;;  %s20_s16 = int_to_ptr.vmem [resolvable:$true] %s19_s16 }
   0x5   :  { %p751_p1 = scmp.lt.u32.totalorder %s747_s19, %s1370_s0 }
   0x7   :  { %p753_p2 = pnand %p751_p1, %p748_p0 }
   0x9   :  { %756 = shalt.err (!%p753_p2)
}
   0xa   :  { %s757_s24 = scalar_lea.vmem %s20_s16, 256  ;;  %p762_p4 = scmp.lt.s32.totalorder %s20_s16, %s20_s16 }
   0xb   :  { %p758_p3 = scmp.ne.s32.totalorder %s20_s16, %s757_s24  ;;  %p763_p5 = scmp.lt.s32.totalorder %s757_s24, %s757_s24 }
   0xd   :  { %p764_p6 = por %p763_p5, %p762_p4 }
   0xf   :  { %p765_p7 = pnand %p764_p6, %p758_p3 }
  0x11   :  { %768 = shalt.err (!%p765_p7)
}
  0x12   :  { %s834_s25 = smov 128   ;;  %s835_s26 = smov 8  }
  0x13   :  { %25 = dma.hbm_to_vmem [thread:$0]  %s1370_s0, 256, %s20_s16, [#allocation4], %s834_s25, %s834_s25, %s835_s26  }
  0x14   :  { %s836_s29 = smov [#allocation7]   ;;  %s44_s7 = sshll.u32 %s1372_s2, 4  ;;  %s45_s7 = int_to_ptr.vmem [resolvable:$true] %s44_s7 }
  0x15   :  { %s31_s30 = sshll.u32 %s836_s29, 4  ;;  %s769_s10 = scalar_lea.hbm %s1371_s1, 256  ;;  %s32_s30 = int_to_ptr.vmem [resolvable:$true] %s31_s30 }
  0x16   :  { %p770_p8 = scmp.ne.s32.totalorder %s1371_s1, %s769_s10  ;;  %p773_p9 = scmp.lt.u32.totalorder %s769_s10, %s1371_s1 }
  0x18   :  { %p775_p10 = pnand %p773_p9, %p770_p8 }
  0x1a   :  { %778 = shalt.err (!%p775_p10)
}
  0x1b   :  { %s779_s0 = scalar_lea.vmem %s32_s30, 256  ;;  %p784_p12 = scmp.lt.s32.totalorder %s32_s30, %s32_s30 }
  0x1c   :  { %p780_p11 = scmp.ne.s32.totalorder %s32_s30, %s779_s0  ;;  %p785_p13 = scmp.lt.s32.totalorder %s779_s0, %s779_s0 }
  0x1e   :  { %p786_p0 = por %p785_p13, %p784_p12 }
  0x20   :  { %p787_p1 = pnand %p786_p0, %p780_p11 }
  0x22   :  { %790 = shalt.err (!%p787_p1)
}
  0x23   :  { %37 = dma.hbm_to_vmem [thread:$0]  %s1371_s1, 256, %s32_s30, [#allocation8], %s834_s25, %s834_s25, %s835_s26  }
  0x24   :  { %s791_s16 = scalar_lea.vmem %s45_s7, 16  ;;  %p796_p3 = scmp.lt.s32.totalorder %s45_s7, %s45_s7 }
  0x25   :  { %p792_p2 = scmp.ne.s32.totalorder %s45_s7, %s791_s16  ;;  %p797_p4 = scmp.lt.s32.totalorder %s791_s16, %s791_s16 }
  0x27   :  { %p798_p5 = por %p797_p4, %p796_p3 }
  0x29   :  { %p799_p6 = pnand %p798_p5, %p792_p2 }
  0x2b   :  { %802 = shalt.err (!%p799_p6)
}
  0x2c   :  { %s837_s17 = smov [#allocation9]  }
  0x2d   :  { %47 = dma.vmem_to_smem %s45_s7, 16, %s837_s17, [#allocation6]  }
  0x2e   :  { %825 = dma.done.wait [#allocation4], 256  }
  0x2f   :  { %826 = vsyncadd [#allocation4], 4294967040 }
  0x30   :  { %827 = dma.done.wait [#allocation8], 256  }
  0x31   :  { %828 = vsyncadd [#allocation8], 4294967040 }
  0x32   :  { %829 = dma.done.wait [#allocation6], 16  }
  0x33   :  { %830 = vsyncadd [#allocation6], 4294967280 }
  0x34   :  { %59 = sfence }
  0x35   :  { %s724_s18 = sld [smem:[#allocation9 + $0x1]]  ;;  %v894_v0 = vld [vmem:[#allocation7] sm:$0xff]  ;;  %v896_v1 = vld [vmem:[#allocation3] sm:$0xff]  ;;  %v898_v2 = vld [vmem:[#allocation7 + $0x8] sm:$0xff]  ;;  %s725_s1 = sld [smem:[#allocation9 + $0x2]]  ;;  %vm108_vm0 = vcmask 1046528  }
  0x36   :  { %v900_v3 = vld [vmem:[#allocation3 + $0x8] sm:$0xff]  ;;  %v908_v5 = vmul.f32 %v894_v0, %v896_v1  ;;  %s838_s19 = smov 127   ;;  %s727_s20 = sld [smem:[#allocation9 + $0x4]]  ;;  %v932_v14 = vmul.f32 %v896_v1, %v896_v1  ;;  %v946_v18 = vmul.f32 %v898_v2, %v898_v2  ;;  %v952_v20 = vmul.f32 %v894_v0, %v894_v0 }
  0x37   :  { %v904_v4 = vmul.f32 %v898_v2, %v900_v3  ;;  %s731_s21 = sld [smem:[#allocation9 + $0x8]]  ;;  %s839_s22 = smov 126   ;;  %v942_v17 = vmul.f32 %v900_v3, %v900_v3  ;;  %vm153_vm1 = vcmask 1045504   ;;  %vm690_vm4 = vcmask 244736  }
  0x38   :  { %s728_s23 = sld [smem:[#allocation9 + $0x5]]  ;;  %s726_s24 = sld [smem:[#allocation9 + $0x3]]  ;;  %vm692_vm5 = vcmask 242688   ;;  %vm705_vm6 = vcmask 0  }
  0x39   :  { %s729_s25 = sld [smem:[#allocation9 + $0x6]]  ;;  %s1073_s26 = sld [smem:[#allocation9 + $0x7]] }
  0x3a   :  { %s60_s27 = sld [smem:[#allocation9]] }
  0x3b   :  { %v910_v6 = vstv %s724_s18  ;;  %v922_v11 = vstv %s725_s1 }
  0x3c   :  { %v198_v7 = vmul.f32 %v910_v6, %v894_v0  ;;  %v78_v8 = vmul.f32 %v910_v6, %v896_v1  ;;  %v199_v9 = vmul.f32 %v910_v6, %v898_v2  ;;  %v79_v10 = vmul.f32 %v910_v6, %v900_v3 }
  0x3d   :  { %v92_v12 = vmul.f32 %v922_v11, %v900_v3  ;;  %v91_v13 = vmul.f32 %v922_v11, %v896_v1  ;;  %v211_v15 = vmul.f32 %v922_v11, %v898_v2  ;;  %v210_v16 = vmul.f32 %v922_v11, %v894_v0 }
  0x3e   :  { %202 = vrot.lane.b32.xlu1 %v198_v7, %s838_s19  ;;  %82 = vrot.lane.b32.xlu0 %v78_v8, %s838_s19  ;;  %v948_v19 = vstv %s727_s20  ;;  %v429_v21 = vmul.f32 %v942_v17, %v910_v6  ;;  %v428_v22 = vmul.f32 %v932_v14, %v910_v6  ;;  %v547_v25 = vmul.f32 %v946_v18, %v910_v6 }
  0x3f   :  { %v118_v23 = vmul.f32 %v948_v19, %v900_v3  ;;  %v117_v24 = vmul.f32 %v948_v19, %v896_v1  ;;  %v966_v26 = vstv %s731_s21  ;;  %v546_v27 = vmul.f32 %v952_v20, %v910_v6 }
  0x40   :  { %v234_v28 = vmul.f32 %v948_v19, %v898_v2  ;;  %v974_v29 = vmul.f32 %v966_v26, %v900_v3  ;;  %v178_v30 = vmul.f32 %v966_v26, %v896_v1  ;;  %v233_v31 = vmul.f32 %v948_v19, %v894_v0 }
  0x41   :  { %v984_v32 = vmul.f32 %v966_v26, %v898_v2  ;;  %v289_v33 = vmul.f32 %v966_v26, %v894_v0  ;;  %v122_v34 = vrot.slane %v118_v23, 1  ;;  %v121_v35 = vrot.slane %v117_v24, 1 }
  0x42   :  { %204 = vrot.lane.b32.xlu1 %v199_v9, %s838_s19  ;;  %84 = vrot.lane.b32.xlu0 %v79_v10, %s838_s19  ;;  %v183_v36 = vrot.slane %v974_v29, 2  ;;  %v182_v37 = vrot.slane %v178_v30, 2  ;;  %v238_v40 = vrot.slane %v234_v28, 1  ;;  %v997_v42 = vmul.f32 %v942_v17, %v966_v26 }
  0x43   :  { %v294_v38 = vrot.slane %v984_v32, 2  ;;  %v293_v39 = vrot.slane %v289_v33, 2  ;;  %v519_v43 = vmul.f32 %v932_v14, %v966_v26  ;;  %v237_v44 = vrot.slane %v233_v31, 1 }
  0x44   :  { %v993_v41 = vsel %vm153_vm1, %v182_v37, %v183_v36  ;;  %v1003_v45 = vstv %s728_s23  ;;  %v1012_v47 = vmul.f32 %v946_v18, %v966_v26  ;;  %v123_v48 = vsel %vm108_vm0, %v121_v35, %v122_v34 }
  0x45   :  { %v1008_v46 = vsel %vm153_vm1, %v293_v39, %v294_v38  ;;  %v524_v49 = vrot.slane %v997_v42, 2  ;;  %v523_v50 = vrot.slane %v519_v43, 2  ;;  %v637_v51 = vmul.f32 %v952_v20, %v966_v26 }
  0x46   :  { %97 = vrot.lane.b32.xlu1 %v92_v12, %s839_s22  ;;  %95 = vrot.lane.b32.xlu0 %v91_v13, %s839_s22  ;;  %v642_v52 = vrot.slane %v1012_v47, 2  ;;  %v134_v55 = vmul.f32 %v1003_v45, %v900_v3  ;;  %v133_v56 = vmul.f32 %v1003_v45, %v896_v1  ;;  %v239_v57 = vsel %vm108_vm0, %v237_v44, %v238_v40 }
  0x47   :  { %v1022_v53 = vsel %vm153_vm1, %v523_v50, %v524_v49  ;;  %v641_v54 = vrot.slane %v637_v51, 2  ;;  %v441_v59 = vmul.f32 %v942_v17, %v922_v11  ;;  %v249_v60 = vmul.f32 %v1003_v45, %v898_v2 }
  0x48   :  { %v248_v61 = vmul.f32 %v1003_v45, %v894_v0  ;;  %v440_v62 = vmul.f32 %v932_v14, %v922_v11  ;;  %v138_v63 = vrot.slane %v134_v55, 1  ;;  %v137_v7 = vrot.slane %v133_v56, 1 }
  0x49   :  { %v1034_v58 = vsel %vm153_vm1, %v641_v54, %v642_v52  ;;  %v1046_v8 = vstv %s726_s24  ;;  %v559_v9 = vmul.f32 %v946_v18, %v922_v11  ;;  %v558_v10 = vmul.f32 %v952_v20, %v922_v11 }
  0x4a   :  { %216 = vrot.lane.b32.xlu1 %v211_v15, %s839_s22  ;;  %214 = vrot.lane.b32.xlu0 %v210_v16, %s839_s22  ;;  %v464_v12 = vmul.f32 %v942_v17, %v948_v19  ;;  %v463_v13 = vmul.f32 %v932_v14, %v948_v19  ;;  %v253_v15 = vrot.slane %v249_v60, 1  ;;  %v252_v16 = vrot.slane %v248_v61, 1 }
  0x4b   :  { %v139_v23 = vsel %vm108_vm0, %v137_v7, %v138_v63  ;;  %v1067_v24 = vmul.f32 %v1046_v8, %v898_v2  ;;  %v1078_v31 = vmul.f32 %v942_v17, %v1046_v8  ;;  %v452_v33 = vmul.f32 %v932_v14, %v1046_v8 }
  0x4c   :  { %v1085_v37 = vmul.f32 %v946_v18, %v1046_v8  ;;  %v570_v39 = vmul.f32 %v952_v20, %v1046_v8  ;;  %v311_v32 = vmul.f32 %v904_v4, %v910_v6  ;;  %v346_v42 = vmul.f32 %v904_v4, %v948_v19 }
  0x4d   :  { %v457_v43 = vrot.slane %v1078_v31, 1  ;;  %v456_v44 = vrot.slane %v452_v33, 1  ;;  %v254_v33 = vsel %vm108_vm0, %v252_v16, %v253_v15  ;;  %v323_v47 = vmul.f32 %v904_v4, %v922_v11 }
  0x4e   :  { %434 = vrot.lane.b32.xlu1 %v429_v21, %s838_s19  ;;  %432 = vrot.lane.b32.xlu0 %v428_v22, %s838_s19  ;;  %v1058_v21 = vmul.f32 %v1046_v8, %v900_v3  ;;  %v104_v22 = vmul.f32 %v1046_v8, %v896_v1  ;;  %v1375_v51 = vrot.slane %v1085_v37, 1  ;;  %v574_v54 = vrot.slane %v570_v39, 1 }
  0x4f   :  { %v1112_v56 = vsel %vm108_vm0, %v456_v44, %v457_v43  ;;  %v1140_v39 = vstv %s1073_s26 }
  0x50   :  { %v110_v28 = vrot.slane %v1058_v21, 1  ;;  %v109_v30 = vrot.slane %v104_v22, 1  ;;  %v1124_v61 = vsel %vm108_vm0, %v574_v54, %v1375_v51  ;;  %v467_v22 = vrot.slane %v463_v13, 1 }
  0x51   :  { %v162_v13 = vmul.f32 %v1140_v39, %v896_v1 }
  0x52   :  { %552 = vrot.lane.b32.xlu1 %v547_v25, %s838_s19  ;;  %550 = vrot.lane.b32.xlu0 %v546_v27, %s838_s19  ;;  %v222_v25 = vmul.f32 %v1046_v8, %v894_v0  ;;  %v1071_v27 = vstv %s729_s25 }
  0x53   :  { %v149_v55 = vmul.f32 %v1071_v27, %v896_v1  ;;  %v263_v60 = vmul.f32 %v1071_v27, %v894_v0 }
  0x54   :  { %v226_v35 = vrot.slane %v222_v25, 1  ;;  %v582_v25 = vmul.f32 %v946_v18, %v948_v19 }
  0x56   :  { %126 = vrot.lane.b32.xlu1 %v122_v34, %s838_s19  ;;  %124 = vrot.lane.b32.xlu0 %v123_v48, %s838_s19  ;;  %v227_v34 = vrot.slane %v1067_v24, 1  ;;  %v1097_v48 = vmul.f32 %v1071_v27, %v900_v3 }
  0x58   :  { %v1104_v50 = vsel %vm108_vm0, %v226_v35, %v227_v34  ;;  %v581_v35 = vmul.f32 %v952_v20, %v948_v19 }
  0x5a   :  { %242 = vrot.lane.b32.xlu1 %v238_v40, %s838_s19  ;;  %240 = vrot.lane.b32.xlu0 %v239_v57, %s838_s19  ;;  %v1092_v40 = vsel %vm108_vm0, %v109_v30, %v110_v28  ;;  %v155_v57 = vrot.slane %v1097_v48, 2  ;;  %v585_v44 = vrot.slane %v581_v35, 1 }
  0x5e   :  { %446 = vrot.lane.b32.xlu1 %v441_v59, %s839_s22  ;;  %444 = vrot.lane.b32.xlu0 %v440_v62, %s839_s22  ;;  %v1117_v59 = vmul.f32 %v1071_v27, %v898_v2  ;;  %v154_v62 = vrot.slane %v149_v55, 2  ;;  %v166_v55 = vrot.slane %v162_v13, 2  ;;  %v478_v13 = vmul.f32 %v932_v14, %v1003_v45 }
  0x60   :  { %v1377_v7 = vrot.slane %v1117_v59, 2  ;;  %v1134_v30 = vsel %vm153_vm1, %v154_v62, %v155_v57  ;;  %v274_v62 = vmul.f32 %v1140_v39, %v894_v0  ;;  %v482_v51 = vrot.slane %v478_v13, 1 }
  0x62   :  { %564 = vrot.lane.b32.xlu1 %v559_v9, %s839_s22  ;;  %562 = vrot.lane.b32.xlu0 %v558_v10, %s839_s22  ;;  %v267_v9 = vrot.slane %v263_v60, 2  ;;  %v468_v10 = vrot.slane %v464_v12, 1  ;;  %v163_v12 = vmul.f32 %v1140_v39, %v900_v3 }
  0x64   :  { %v469_v16 = vsel %vm108_vm0, %v467_v22, %v468_v10  ;;  %v167_v54 = vrot.slane %v163_v12, 2  ;;  %v493_v22 = vmul.f32 %v932_v14, %v1071_v27  ;;  %v479_v12 = vmul.f32 %v942_v17, %v1003_v45 }
  0x66   :  { %142 = vrot.lane.b32.xlu1 %v138_v63, %s839_s22  ;;  %140 = vrot.lane.b32.xlu0 %v139_v23, %s839_s22  ;;  %v1145_v63 = vsel %vm153_vm1, %v267_v9, %v1377_v7  ;;  %v586_v23 = vrot.slane %v582_v25, 1  ;;  %v1163_v9 = vmul.f32 %v942_v17, %v1071_v27  ;;  %v497_v25 = vrot.slane %v493_v22, 2 }
  0x67   :  { %v597_v22 = vmul.f32 %v946_v18, %v1003_v45 }
  0x68   :  { %v587_v60 = vsel %vm108_vm0, %v585_v44, %v586_v23 }
  0x6a   :  { %257 = vrot.lane.b32.xlu1 %v253_v15, %s839_s22  ;;  %255 = vrot.lane.b32.xlu0 %v254_v33, %s839_s22  ;;  %v275_v15 = vmul.f32 %v1140_v39, %v898_v2  ;;  %v168_v33 = vsel %vm153_vm1, %v166_v55, %v167_v54  ;;  %v611_v55 = vmul.f32 %v952_v20, %v1071_v27 }
  0x6c   :  { %v279_v35 = vrot.slane %v275_v15, 2 }
  0x6e   :  { %472 = vrot.lane.b32.xlu1 %v468_v10, %s838_s19  ;;  %470 = vrot.lane.b32.xlu0 %v469_v16, %s838_s19  ;;  %v1376_v10 = vrot.slane %v1163_v9, 2  ;;  %v278_v16 = vrot.slane %v274_v62, 2  ;;  %v483_v62 = vrot.slane %v479_v12, 1 }
  0x70   :  { %v1178_v44 = vsel %vm153_vm1, %v497_v25, %v1376_v10  ;;  %v280_v25 = vsel %vm153_vm1, %v278_v16, %v279_v35  ;;  %v596_v10 = vmul.f32 %v952_v20, %v1003_v45  ;;  %v505_v16 = vmul.f32 %v942_v17, %v1140_v39 }
  0x72   :  { %590 = vrot.lane.b32.xlu1 %v586_v23, %s838_s19  ;;  %588 = vrot.lane.b32.xlu0 %v587_v60, %s838_s19  ;;  %v1182_v23 = vmul.f32 %v946_v18, %v1071_v27  ;;  %v615_v60 = vrot.slane %v611_v55, 2  ;;  %v600_v12 = vrot.slane %v596_v10, 1  ;;  %v623_v55 = vmul.f32 %v946_v18, %v1140_v39 }
  0x74   :  { %v616_v15 = vrot.slane %v1182_v23, 2  ;;  %v334_v23 = vmul.f32 %v908_v5, %v1046_v8 }
  0x76   :  { %171 = vrot.lane.b32.xlu1 %v167_v54, %s838_s19  ;;  %169 = vrot.lane.b32.xlu0 %v168_v33, %s838_s19  ;;  %v1197_v7 = vsel %vm153_vm1, %v615_v60, %v616_v15  ;;  %v484_v54 = vsel %vm108_vm0, %v482_v51, %v483_v62  ;;  %v601_v33 = vrot.slane %v597_v22, 1  ;;  %v509_v51 = vrot.slane %v505_v16, 2 }
  0x77   :  { %v622_v60 = vmul.f32 %v952_v20, %v1140_v39  ;;  %v401_v16 = vmul.f32 %v908_v5, %v966_v26 }
  0x78   :  { %v602_v13 = vsel %vm108_vm0, %v600_v12, %v601_v33 }
  0x7a   :  { %283 = vrot.lane.b32.xlu1 %v279_v35, %s838_s19  ;;  %281 = vrot.lane.b32.xlu0 %v280_v25, %s838_s19  ;;  %v504_v35 = vmul.f32 %v932_v14, %v1140_v39 }
  0x7c   :  { %v508_v10 = vrot.slane %v504_v35, 2  ;;  %v1275_v35 = vstv %s60_s27 }
  0x7e   :  { %487 = vrot.lane.b32.xlu1 %v483_v62, %s839_s22  ;;  %485 = vrot.lane.b32.xlu0 %v484_v54, %s839_s22  ;;  %v510_v29 = vsel %vm153_vm1, %v508_v10, %v509_v51  ;;  %v626_v62 = vrot.slane %v622_v60, 2  ;;  %v386_v54 = vmul.f32 %v908_v5, %v1140_v39  ;;  %v405_v10 = vrot.slane %v401_v16, 2 }
  0x7f   :  { %v75_v60 = vmul.f32 %v1275_v35, %v896_v1 }
  0x80   :  { %v390_v12 = vrot.slane %v386_v54, 2 }
  0x82   :  { %605 = vrot.lane.b32.xlu1 %v601_v33, %s839_s22  ;;  %603 = vrot.lane.b32.xlu0 %v602_v13, %s839_s22  ;;  %v402_v13 = vmul.f32 %v904_v4, %v966_v26 }
  0x86   :  { %187 = vrot.lane.b32.xlu1 %v183_v36, %s839_s22  ;;  %185 = vrot.lane.b32.xlu0 %v993_v41, %s839_s22  ;;  %v627_v36 = vrot.slane %v623_v55, 2  ;;  %v196_v55 = vmul.f32 %v1275_v35, %v894_v0 }
  0x88   :  { %v628_v41 = vsel %vm153_vm1, %v626_v62, %v627_v36 }
  0x8a   :  { %298 = vrot.lane.b32.xlu1 %v294_v38, %s839_s22  ;;  %296 = vrot.lane.b32.xlu0 %v1008_v46, %s839_s22  ;;  %v310_v38 = vmul.f32 %v908_v5, %v910_v6  ;;  %v345_v46 = vmul.f32 %v908_v5, %v948_v19  ;;  %v361_v6 = vmul.f32 %v904_v4, %v1003_v45 }
  0x8b   :  { %v387_v19 = vmul.f32 %v904_v4, %v1140_v39 }
  0x8c   :  { %v365_v25 = vrot.slane %v361_v6, 1 }
  0x8e   :  { %513 = vrot.lane.b32.xlu1 %v509_v51, %s838_s19  ;;  %511 = vrot.lane.b32.xlu0 %v510_v29, %s838_s19  ;;  %v406_v51 = vrot.slane %v402_v13, 2 }
  0x90   :  { %v407_v26 = vsel %vm153_vm1, %v405_v10, %v406_v51 }
  0x92   :  { %631 = vrot.lane.b32.xlu1 %v627_v36, %s838_s19  ;;  %629 = vrot.lane.b32.xlu0 %v628_v41, %s838_s19 }
  0x96   :  { %528 = vrot.lane.b32.xlu1 %v524_v49, %s839_s22  ;;  %526 = vrot.lane.b32.xlu0 %v1022_v53, %s839_s22  ;;  %v322_v49 = vmul.f32 %v908_v5, %v922_v11  ;;  %v349_v53 = vrot.slane %v345_v46, 1 }
  0x9a   :  { %646 = vrot.lane.b32.xlu1 %v642_v52, %s839_s22  ;;  %644 = vrot.lane.b32.xlu0 %v1034_v58, %s839_s22  ;;  %v350_v52 = vrot.slane %v346_v42, 1  ;;  %v360_v58 = vmul.f32 %v908_v5, %v1003_v45  ;;  %v391_v45 = vrot.slane %v387_v19, 2 }
  0x9c   :  { %v351_v22 = vsel %vm108_vm0, %v349_v53, %v350_v52  ;;  %v364_v11 = vrot.slane %v360_v58, 1  ;;  %v392_v39 = vsel %vm153_vm1, %v390_v12, %v391_v45 }
  0x9e   :  { %316 = vrot.lane.b32.xlu1 %v311_v32, %s838_s19  ;;  %314 = vrot.lane.b32.xlu0 %v310_v38, %s838_s19  ;;  %v366_v33 = vsel %vm108_vm0, %v364_v11, %v365_v25  ;;  %v197_v32 = vmul.f32 %v1275_v35, %v898_v2  ;;  %v76_v38 = vmul.f32 %v1275_v35, %v900_v3 }
  0x9f   :  { %v426_v11 = vmul.f32 %v932_v14, %v1275_v35 }
  0xa2   :  { %328 = vrot.lane.b32.xlu1 %v323_v47, %s839_s22  ;;  %326 = vrot.lane.b32.xlu0 %v322_v49, %s839_s22 }
  0xa6   :  { %354 = vrot.lane.b32.xlu1 %v350_v52, %s838_s19  ;;  %352 = vrot.lane.b32.xlu0 %v351_v22, %s838_s19 }
  0xaa   :  { %369 = vrot.lane.b32.xlu1 %v365_v25, %s839_s22  ;;  %367 = vrot.lane.b32.xlu0 %v366_v33, %s839_s22  ;;  %v427_v25 = vmul.f32 %v942_v17, %v1275_v35  ;;  %v544_v17 = vmul.f32 %v952_v20, %v1275_v35 }
  0xae   :  { %395 = vrot.lane.b32.xlu1 %v391_v45, %s838_s19  ;;  %393 = vrot.lane.b32.xlu0 %v392_v39, %s838_s19 }
  0xb0   :  { %v203_v29 = vpop.permute.xlu1 %202  ;;  %v83_v36 = vpop.permute.xlu0 %82 }
  0xb1   :  { %v208_v62 = vadd.f32 %v203_v29, %v196_v55  ;;  %v88_v41 = vadd.f32 %v83_v36, %v75_v60 }
  0xb2   :  { %410 = vrot.lane.b32.xlu1 %v406_v51, %s839_s22  ;;  %408 = vrot.lane.b32.xlu0 %v407_v26, %s839_s22 }
  0xb4   :  { %v205_v0 = vpop.permute.xlu1 %204  ;;  %v85_v1 = vpop.permute.xlu0 %84 }
  0xb5   :  { %v209_v42 = vadd.f32 %v205_v0, %v197_v32  ;;  %v89_v46 = vadd.f32 %v85_v1, %v76_v38 }
  0xb8   :  { %v98_v47 = vpop.permute.xlu1 %97  ;;  %v96_v49 = vpop.permute.xlu0 %95 }
  0xb9   :  { %v102_v52 = vadd.f32 %v98_v47, %v89_v46  ;;  %v101_v53 = vadd.f32 %v96_v49, %v88_v41 }
  0xbb   :  { %v115_v6 = vadd.f32 %v110_v28, %v102_v52  ;;  %v114_v2 = vadd.f32 %v1092_v40, %v101_v53 }
  0xbc   :  { %v217_v58 = vpop.permute.xlu1 %216  ;;  %v215_v19 = vpop.permute.xlu0 %214 }
  0xbd   :  { %v221_v3 = vadd.f32 %v217_v58, %v209_v42  ;;  %v220_v22 = vadd.f32 %v215_v19, %v208_v62 }
  0xbf   :  { %v232_v54 = vadd.f32 %v227_v34, %v221_v3  ;;  %v231_v45 = vadd.f32 %v1104_v50, %v220_v22 }
  0xc0   :  { %v435_v33 = vpop.permute.xlu1 %434  ;;  %v433_v21 = vpop.permute.xlu0 %432 }
  0xc1   :  { %v439_v28 = vadd.f32 %v435_v33, %v427_v25  ;;  %v438_v12 = vadd.f32 %v433_v21, %v426_v11 }
  0xc4   :  { %v553_v40 = vpop.permute.xlu1 %552  ;;  %v551_v13 = vpop.permute.xlu0 %550 }
  0xc5   :  { %v556_v34 = vadd.f32 %v551_v13, %v544_v17 }
  0xc8   :  { %v127_v16 = vpop.permute.xlu1 %126  ;;  %v125_v39 = vpop.permute.xlu0 %124 }
  0xc9   :  { %v131_v41 = vadd.f32 %v127_v16, %v115_v6  ;;  %v130_v32 = vadd.f32 %v125_v39, %v114_v2  ;;  %v1378_v6 = vrot.slane %v1117_v59, 2  ;;  %v1379_v59 = vrot.slane %v1163_v9, 2 }
  0xcc   :  { %v243_v51 = vpop.permute.xlu1 %242  ;;  %v241_v10 = vpop.permute.xlu0 %240 }
  0xcd   :  { %v247_v46 = vadd.f32 %v243_v51, %v232_v54  ;;  %v246_v47 = vadd.f32 %v241_v10, %v231_v45  ;;  %v545_v10 = vmul.f32 %v946_v18, %v1275_v35 }
  0xd0   :  { %v447_v55 = vpop.permute.xlu1 %446  ;;  %v445_v14 = vpop.permute.xlu0 %444 }
  0xd1   :  { %v451_v60 = vadd.f32 %v447_v55, %v439_v28  ;;  %v450_v24 = vadd.f32 %v445_v14, %v438_v12 }
  0xd3   :  { %v462_v50 = vadd.f32 %v457_v43, %v451_v60  ;;  %v461_v26 = vadd.f32 %v1112_v56, %v450_v24 }
  0xd4   :  { %v565_v29 = vpop.permute.xlu1 %564  ;;  %v563_v36 = vpop.permute.xlu0 %562 }
  0xd5   :  { %v568_v62 = vadd.f32 %v563_v36, %v556_v34  ;;  %v557_v34 = vadd.f32 %v553_v40, %v545_v10 }
  0xd7   :  { %v579_v38 = vadd.f32 %v1124_v61, %v568_v62 }
  0xd8   :  { %v143_v0 = vpop.permute.xlu1 %142  ;;  %v141_v1 = vpop.permute.xlu0 %140 }
  0xd9   :  { %v147_v20 = vadd.f32 %v143_v0, %v131_v41  ;;  %v146_v42 = vadd.f32 %v141_v1, %v130_v32  ;;  %v569_v32 = vadd.f32 %v565_v29, %v557_v34 }
  0xdb   :  { %v160_v49 = vadd.f32 %v155_v57, %v147_v20  ;;  %v159_v31 = vadd.f32 %v1134_v30, %v146_v42 }
  0xdc   :  { %v258_v43 = vpop.permute.xlu1 %257  ;;  %v256_v56 = vpop.permute.xlu0 %255 }
  0xdd   :  { %v262_v52 = vadd.f32 %v258_v43, %v247_v46  ;;  %v261_v53 = vadd.f32 %v256_v56, %v246_v47  ;;  %v1380_v46 = vrot.slane %v1085_v37, 1 }
  0xdf   :  { %v273_v2 = vadd.f32 %v1378_v6, %v262_v52  ;;  %v272_v61 = vadd.f32 %v1145_v63, %v261_v53  ;;  %v580_v47 = vadd.f32 %v1380_v46, %v569_v32 }
  0xe0   :  { %v473_v58 = vpop.permute.xlu1 %472  ;;  %v471_v19 = vpop.permute.xlu0 %470 }
  0xe1   :  { %v477_v57 = vadd.f32 %v473_v58, %v462_v50  ;;  %v476_v45 = vadd.f32 %v471_v19, %v461_v26 }
  0xe4   :  { %v591_v3 = vpop.permute.xlu1 %590  ;;  %v589_v22 = vpop.permute.xlu0 %588 }
  0xe5   :  { %v594_v12 = vadd.f32 %v589_v22, %v579_v38  ;;  %v595_v29 = vadd.f32 %v591_v3, %v580_v47 }
  0xe8   :  { %v172_v25 = vpop.permute.xlu1 %171  ;;  %v170_v11 = vpop.permute.xlu0 %169 }
  0xe9   :  { %v176_v60 = vadd.f32 %v172_v25, %v160_v49  ;;  %v175_v24 = vadd.f32 %v170_v11, %v159_v31 }
  0xec   :  { %v284_v54 = vpop.permute.xlu1 %283  ;;  %v282_v48 = vpop.permute.xlu0 %281 }
  0xed   :  { %v288_v50 = vadd.f32 %v284_v54, %v273_v2  ;;  %v287_v26 = vadd.f32 %v282_v48, %v272_v61 }
  0xf0   :  { %v488_v30 = vpop.permute.xlu1 %487  ;;  %v486_v33 = vpop.permute.xlu0 %485 }
  0xf1   :  { %v492_v21 = vadd.f32 %v488_v30, %v477_v57  ;;  %v491_v28 = vadd.f32 %v486_v33, %v476_v45 }
  0xf3   :  { %v503_v13 = vadd.f32 %v1379_v59, %v492_v21  ;;  %v502_v63 = vadd.f32 %v1178_v44, %v491_v28  ;;  %v1322_v44 = vstv %s1373_s3  ;;  %s841_s3 = smov [#allocation10]  }
  0xf4   :  { %v606_v16 = vpop.permute.xlu1 %605  ;;  %v604_v39 = vpop.permute.xlu0 %603  ;;  %s713_s30 = sshll.u32 %s841_s3, 4  ;;  %s714_s30 = int_to_ptr.vmem [resolvable:$true] %s713_s30 }
  0xf5   :  { %v609_v51 = vadd.f32 %v604_v39, %v594_v12  ;;  %v610_v52 = vadd.f32 %v606_v16, %v595_v29  ;;  %v335_v12 = vmul.f32 %v904_v4, %v1046_v8  ;;  %v309_v16 = vmul.f32 %v904_v4, %v1275_v35  ;;  %s803_s6 = scalar_lea.vmem %s714_s30, 16  ;;  %s807_s7 = scalar_lea.vmem %s714_s30, 32 }
  0xf6   :  { %v308_v39 = vmul.f32 %v908_v5, %v1275_v35  ;;  %v338_v8 = vrot.slane %v334_v23, 1  ;;  %p804_p7 = scmp.ne.s32.totalorder %s714_s30, %s803_s6  ;;  %p808_p8 = scmp.lt.s32.totalorder %s714_s30, %s714_s30 }
  0xf7   :  { %v620_v17 = vadd.f32 %v1197_v7, %v609_v51  ;;  %v621_v22 = vadd.f32 %v616_v15, %v610_v52  ;;  %p809_p9 = scmp.lt.s32.totalorder %s807_s7, %s803_s6 }
  0xf8   :  { %v188_v55 = vpop.permute.xlu1 %187  ;;  %v186_v14 = vpop.permute.xlu0 %185 }
  0xf9   :  { %v192_v36 = vadd.f32 %v188_v55, %v176_v60  ;;  %v191_v9 = vadd.f32 %v186_v14, %v175_v24  ;;  %v339_v24 = vrot.slane %v335_v12, 1  ;;  %p810_p10 = por %p809_p9, %p808_p8 }
  0xfb   :  { %v195_v7 = vadd.f32 %v1322_v44, %v192_v36  ;;  %v194_v0 = vadd.f32 %v1322_v44, %v191_v9  ;;  %v340_v35 = vsel %vm108_vm0, %v338_v8, %v339_v24  ;;  %p811_p11 = pnand %p810_p10, %p804_p7 }
  0xfc   :  { %v299_v62 = vpop.permute.xlu1 %298  ;;  %v297_v41 = vpop.permute.xlu0 %296 }
  0xfd   :  { %v303_v18 = vadd.f32 %v299_v62, %v288_v50  ;;  %v302_v38 = vadd.f32 %v297_v41, %v287_v26  ;;  %v537_v53 = vmul.f32 %v195_v7, %v195_v7  ;;  %v536_v6 = vmul.f32 %v194_v0, %v194_v0 }
  0xff   :  { %v305_v40 = vadd.f32 %v303_v18, %v1322_v44  ;;  %v304_v1 = vadd.f32 %v302_v38, %v1322_v44  ;;  %v539_v11 = vmul.f32 0.012345679, %v537_v53  ;;  %v538_v54 = vmul.f32 0.012345679, %v536_v6 }
 0x100   :  { %v514_v20 = vpop.permute.xlu1 %513  ;;  %v512_v42 = vpop.permute.xlu0 %511  ;;  %v376_v18 = vmul.f32 %v904_v4, %v1071_v27  ;;  %v375_v38 = vmul.f32 %v908_v5, %v1071_v27 }
 0x101   :  { %v1330_v49 = vmul.f32 %v305_v40, %v195_v7  ;;  %v1332_v31 = vmul.f32 %v304_v1, %v194_v0  ;;  %v518_v2 = vadd.f32 %v514_v20, %v503_v13  ;;  %v517_v61 = vadd.f32 %v512_v42, %v502_v63 }
 0x102   :  { %v655_v48 = vmul.f32 %v305_v40, %v305_v40  ;;  %v654_v57 = vmul.f32 %v304_v1, %v304_v1  ;;  %v676_v20 = vlaneseq }
 0x104   :  { %v632_v43 = vpop.permute.xlu1 %631  ;;  %v630_v56 = vpop.permute.xlu0 %629  ;;  %v657_v51 = vmul.f32 0.012345679, %v655_v48  ;;  %v656_v10 = vmul.f32 0.012345679, %v654_v57  ;;  %v677_v52 = vand.u32 127, %v676_v20 }
 0x105   :  { %v636_v45 = vadd.f32 %v632_v43, %v621_v22  ;;  %v635_v3 = vadd.f32 %v630_v56, %v620_v17  ;;  %v380_v43 = vrot.slane %v376_v18, 2  ;;  %v379_v56 = vrot.slane %v375_v38, 2 }
 0x106   :  { %vm678_vm2 = vcmp.ge.s32.totalorder %v677_v52, 16 }
 0x107   :  { %v381_v5 = vsel %vm153_vm1, %v379_v56, %v380_v43 }
 0x108   :  { %v529_v58 = vpop.permute.xlu1 %528  ;;  %v527_v19 = vpop.permute.xlu0 %526 }
 0x109   :  { %v533_v25 = vadd.f32 %v529_v58, %v518_v2  ;;  %v532_v37 = vadd.f32 %v527_v19, %v517_v61 }
 0x10b   :  { %v535_v30 = vadd.f32 %v533_v25, %v1322_v44  ;;  %v534_v33 = vadd.f32 %v532_v37, %v1322_v44 }
 0x10c   :  { %v647_v21 = vpop.permute.xlu1 %646  ;;  %v645_v28 = vpop.permute.xlu0 %644 }
 0x10d   :  { %v541_v15 = vsub.f32 %v535_v30, %v539_v11  ;;  %v540_v59 = vsub.f32 %v534_v33, %v538_v54  ;;  %v651_v13 = vadd.f32 %v647_v21, %v636_v45  ;;  %v650_v63 = vadd.f32 %v645_v28, %v635_v3 }
 0x10e   :  { %v840_v11 = vmov 0  }
 0x10f   :  { %v653_v17 = vadd.f32 %v651_v13, %v1322_v44  ;;  %v652_v55 = vadd.f32 %v650_v63, %v1322_v44  ;;  %v679_v54 = vsel %vm678_vm2, 1, %v840_v11 }
 0x110   :  { %v317_v14 = vpop.permute.xlu1 %316  ;;  %v315_v60 = vpop.permute.xlu0 %314  ;;  %v680_v28 = vmul.u32 16, %v679_v54 }
 0x111   :  { %v659_v34 = vsub.f32 %v653_v17, %v657_v51  ;;  %v658_v50 = vsub.f32 %v652_v55, %v656_v10  ;;  %v321_v9 = vadd.f32 %v317_v14, %v309_v16  ;;  %v320_v62 = vadd.f32 %v315_v60, %v308_v39 }
 0x112   :  { %v681_v51 = vsub.s32 %v677_v52, %v680_v28 }
 0x113   :  { %v661_v26 = vmul.f32 %v659_v34, %v541_v15  ;;  %v660_v36 = vmul.f32 %v658_v50, %v540_v59  ;;  %v421_v15 = vmul.f32 0.012345679, %v1330_v49  ;;  %v420_v59 = vmul.f32 0.012345679, %v1332_v31 }
 0x114   :  { %v329_v41 = vpop.permute.xlu1 %328  ;;  %v327_v32 = vpop.permute.xlu0 %326  ;;  %vm685_vm3 = vcmp.lt.s32.totalorder %v681_v51, 14 }
 0x115   :  { %v663_v7 = vadd.f32 2.220446e-16, %v661_v26  ;;  %v662_v0 = vadd.f32 2.220446e-16, %v660_v36  ;;  %v333_v40 = vadd.f32 %v329_v41, %v321_v9  ;;  %v332_v1 = vadd.f32 %v327_v32, %v320_v62 }
 0x117   :  { %743 = vrcp.f32 %v663_v7  ;;  %v344_v42 = vadd.f32 %v339_v24, %v333_v40  ;;  %v343_v46 = vadd.f32 %v340_v35, %v332_v1 }
 0x118   :  { %745 = vrcp.f32 %v662_v0  ;;  %v355_v47 = vpop.permute.xlu1 %354  ;;  %v353_v29 = vpop.permute.xlu0 %352 }
 0x119   :  { %v359_v53 = vadd.f32 %v355_v47, %v344_v42  ;;  %v358_v6 = vadd.f32 %v353_v29, %v343_v46 }
 0x11c   :  { %v370_v4 = vpop.permute.xlu1 %369  ;;  %v368_v2 = vpop.permute.xlu0 %367 }
 0x11d   :  { %v374_v27 = vadd.f32 %v370_v4, %v359_v53  ;;  %v373_v61 = vadd.f32 %v368_v2, %v358_v6 }
 0x11f   :  { %v385_v58 = vadd.f32 %v380_v43, %v374_v27  ;;  %v384_v19 = vadd.f32 %v381_v5, %v373_v61 }
 0x120   :  { %v396_v22 = vpop.permute.xlu1 %395  ;;  %v394_v25 = vpop.permute.xlu0 %393 }
 0x121   :  { %v744_v37 = vpop.eup %743  ;;  %v400_v3 = vadd.f32 %v396_v22, %v385_v58  ;;  %v399_v30 = vadd.f32 %v394_v25, %v384_v19 }
 0x122   :  { %v746_v48 = vpop.eup %745  ;;  %v667_v57 = vmul.f32 %v744_v37, %v663_v7 }
 0x123   :  { %v666_v45 = vmul.f32 %v746_v48, %v662_v0 }
 0x124   :  { %v411_v33 = vpop.permute.xlu1 %410  ;;  %v409_v21 = vpop.permute.xlu0 %408  ;;  %v669_v39 = vsub.f32 2.0, %v667_v57 }
 0x125   :  { %v415_v12 = vadd.f32 %v411_v33, %v400_v3  ;;  %v414_v23 = vadd.f32 %v409_v21, %v399_v30  ;;  %v668_v16 = vsub.f32 2.0, %v666_v45 }
 0x126   :  { %v671_v24 = vmul.f32 %v744_v37, %v669_v39 }
 0x127   :  { %v417_v13 = vadd.f32 %v415_v12, %v1322_v44  ;;  %v416_v63 = vadd.f32 %v414_v23, %v1322_v44  ;;  %v670_v60 = vmul.f32 %v746_v48, %v668_v16 }
 0x129   :  { %v423_v10 = vsub.f32 %v417_v13, %v421_v15  ;;  %v422_v17 = vsub.f32 %v416_v63, %v420_v59 }
 0x12b   :  { %v673_v55 = vmul.f32 %v423_v10, %v423_v10  ;;  %v672_v14 = vmul.f32 %v422_v17, %v422_v17 }
 0x12d   :  { %v674_v8 = vmul.f32 %v672_v14, %v670_v60  ;;  %v675_v34 = vmul.f32 %v673_v55, %v671_v24 }
 0x12f   :  { %v688_v49 = vsel %vm685_vm3, %v674_v8, 0.0  ;;  %v689_v31 = vsel %vm685_vm3, %v675_v34, 0.0 }
 0x130   :  { %v691_v50 = vsel %vm690_vm4, %v688_v49, 0.0  ;;  %v693_v26 = vsel %vm692_vm5, %v689_v31, 0.0 }
 0x131   :  { %v694_v36 = vadd.f32 %v693_v26, %v691_v50 }
 0x133   :  { %695 = vadd.xlane.f32.xlu0 %v694_v36 }
 0x1c0   :  { %v696_v44 = vpop.xlane.xlu0 %695 }
 0x1c1   :  { %v697_v9 = vrot.slane %v696_v44, 4 }
 0x1c3   :  { %v698_v62 = vadd.f32 %v697_v9, %v696_v44 }
 0x1c5   :  { %v699_v41 = vrot.slane %v698_v62, 2 }
 0x1c7   :  { %v700_v32 = vadd.f32 %v699_v41, %v698_v62 }
 0x1c9   :  { %v701_v35 = vrot.slane %v700_v32, 1 }
 0x1cb   :  { %v702_v18 = vadd.f32 %v701_v35, %v700_v32 }
 0x1cd   :  { %732 = vpush %v702_v18 }
 0x1fe   :  { %s733_s5 = spop %732 }
 0x1ff   :  { %v704_v38 = vstv %s733_s5 }
 0x200   :  { %706 = vst.msk [vmem:[#allocation10] sm:$0x1] %vm705_vm6, %v704_v38 }
 0x201   :  { %814 = shalt.err (!%p811_p11)
}
 0x202   :  { %s815_s10 = scalar_lea.hbm %s1374_s4, 16 }
 0x203   :  { %p816_p12 = scmp.ne.s32.totalorder %s1374_s4, %s815_s10  ;;  %p819_p13 = scmp.lt.u32.totalorder %s815_s10, %s1374_s4 }
 0x205   :  { %p821_p0 = pnand %p819_p13, %p816_p12 }
 0x207   :  { %824 = shalt.err (!%p821_p0)
}
 0x208   :  { %716 = dma.vmem_to_hbm [thread:$0]  %s714_s30, 16, %s1374_s4, [#allocation5]  }
 0x209   :  { %831 = dma.done.wait [#allocation5], 16  }
 0x20a   :  { %832 = vsyncadd [#allocation5], 4294967280 }
 0x20b   :  { %720 = vsyncpa [#allocation4], 1 }
 0x20c   :  { %721 = vsyncpa [#allocation8], 1 }
 0x20d   :  { %722 = vsyncpa [#allocation5], 1 }
 0x20e   :  { %723 = vsyncpa [#allocation6], 1 }

</bundles_post_ra>
